<compile_context>
chip_gen: v6e
topology: v6e:2x2x1
jax: 0.10.0
libtpu: 0.0.40
codegen_flags: <defaults>
</compile_context>

<pallas_src>
import functools

import jax
import jax.numpy as jnp
from jax.experimental import pallas as pl
from jax.experimental.pallas import tpu as pltpu


def _cdiv(a, b):
    return -(-a // b)


def _round_up(n, m):
    return _cdiv(n, m) * m


def attflat_kernel(x_ref, bias_ref, w1_ref, b1_ref, w2t_ref, b2_ref,
                   wm_ref, bm_ref, out_ref, *, approx_recip=True):
    BB, T, H = x_ref.shape
    G = w2t_ref.shape[0]
    OUT = out_ref.shape[-1]

    x = x_ref[...]                                    # (BB, T, H) bf16
    xf = x.reshape(BB * T, H)                         # flatten batch*seq for MXU

    # --- MLP: Linear(H -> mid) + ReLU (+ dropout: identity at eval time)
    h = jnp.dot(xf, w1_ref[...], preferred_element_type=jnp.float32) + b1_ref[...]
    h = jnp.maximum(h, 0.0)                           # (BB*T, mid) f32

    # --- mid -> G projection
    if G <= 2:
        # VPU multiply + lane reduce per glimpse: keeps the N=G matmul off the
        # MXU (v5e win) and avoids a lane-sparse (BB*T, G) matmul result.
        logit_cols = [
            jnp.sum(h * w2t_ref[g:g + 1, :], axis=-1, keepdims=True)
            + b2_ref[:, g:g + 1]
            for g in range(G)
        ]
    else:
        logits = jax.lax.dot_general(
            h.astype(jnp.bfloat16), w2t_ref[...].astype(jnp.bfloat16),
            dimension_numbers=(((1,), (1,)), ((), ())),
            preferred_element_type=jnp.float32) + b2_ref[...]   # (BB*T, G)
        logit_cols = [logits[:, g:g + 1] for g in range(G)]

    # f32 copy of x for the VPU weighted sum, hoisted out of the glimpse loop.
    x32 = x.astype(jnp.float32)
    bias = bias_ref[...]                              # (BB, T, 1) additive mask

    acc = jnp.zeros((BB, OUT), jnp.float32)
    for g in range(G):                                # G is a small static int
        # masked_fill(mask, -1e9) as an additive bias, softmax over T (dim=1).
        att = logit_cols[g].reshape(BB, T, 1) + bias
        att = att - jnp.max(att, axis=1, keepdims=True)
        att = jnp.exp(att)
        denom = jnp.sum(att, axis=1, keepdims=True)
        if approx_recip:
            att = att * pl.reciprocal(denom, approx=True)
        else:
            att = att / denom
        # Weighted sum over T (VPU mul + sublane reduce), then accumulate the
        # merge against a static slice of W_merge (merge matmul stays at M=BB,
        # no (G, H) -> (1, G*H) relayout).
        atted = jnp.sum(att * x32, axis=1)            # (BB, H) f32
        acc = acc + jnp.dot(atted.astype(jnp.bfloat16),
                            wm_ref[g * H:(g + 1) * H, :],
                            preferred_element_type=jnp.float32)

    out_ref[:, 0, :] = (acc + bm_ref[...]).astype(out_ref.dtype)


def _tpu_generation():
    """Return (vmem_budget_bytes, tensorcores_per_chip) for block sizing."""
    try:
        kind = jax.devices()[0].device_kind.lower()
    except Exception:
        kind = ""
    if "v7" in kind:
        return 48 * 1024 * 1024, 2      # 64 MiB physical VMEM, 2 TCs/chip
    if "v5" in kind or "v6" in kind:
        return 96 * 1024 * 1024, 1      # 128 MiB physical VMEM, 1 TC/chip
    return 40 * 1024 * 1024, 1          # unknown: be conservative


def _pick_block_b(B, T, H, mid, G, out_pad, budget_bytes, num_cores):
    """VMEM-budget-derived batch tile (samples per grid step)."""
    # Single-buffered weights/biases resident in VMEM.
    weight_bytes = (H * mid * 2 + mid * 4 + G * mid * 4 + G * 4
                    + G * H * out_pad * 2 + out_pad * 4)
    # Bytes that scale with block_b: double-buffered streams + intermediates.
    per_b = (2 * T * H * 2            # x (bf16), 2 pipeline buffers
             + 2 * T * 4              # mask bias, 2 buffers
             + 2 * out_pad * 4        # output block, 2 buffers
             + T * mid * 4            # MLP hidden (f32)
             + T * H * 4              # x upcast to f32 for the weighted sum
             + 2 * T * 4 * max(G, 1)  # att / logit intermediates (f32)
             + out_pad * 4)           # merge accumulator
    headroom = 4 << 20
    avail = budget_bytes - weight_bytes - headroom
    cap = max(1, avail // per_b) if avail > 0 else 1
    bb = int(min(B, 256, cap))
    # Multi-TensorCore chips: keep >= num_cores grid steps so the parallel
    # grid axis can be sharded across cores.
    if num_cores > 1 and B >= num_cores:
        bb = min(bb, _cdiv(B, num_cores))
    # Round to a sublane multiple when it does not cost correctness.
    if bb >= 8:
        bb = (bb // 8) * 8
    bb = max(1, min(bb, B))
    # Balance blocks (avoid a tiny ragged tail block).
    bb = _cdiv(B, _cdiv(B, bb))
    return bb


def attflat(x, x_mask, params, *, block_b=None, approx_recip=True):
    """x: (B, T, H) float; x_mask: (B, 1, 1, T) bool (True = padded)."""
    w1, b1, w2, b2, wm, bm = params
    B, T, H = x.shape
    mid = w1.shape[1]
    G = w2.shape[1]
    out_size = wm.shape[1]
    out_pad = _round_up(out_size, 128)                # lane-dense output slab
    out_dtype = x.dtype

    budget, cores = _tpu_generation()
    if block_b is None:
        block_b = _pick_block_b(B, T, H, mid, G, out_pad, budget, cores)
    num_blocks = _cdiv(B, block_b)
    b_pad = num_blocks * block_b

    # x_mask.squeeze(1).squeeze(1).unsqueeze(2) -> (B, T, 1), as additive bias.
    bias = jnp.where(x_mask.reshape(B, T, 1), jnp.float32(-1e9), jnp.float32(0.0))
    x_bf = x.astype(jnp.bfloat16)                     # halve the dominant HBM stream

    if b_pad != B:
        x_bf = jnp.pad(x_bf, ((0, b_pad - B), (0, 0), (0, 0)))
        bias = jnp.pad(bias, ((0, b_pad - B), (0, 0), (0, 0)))

    # bf16 MXU operands for the big weights; small tensors stay f32.
    w1_bf = w1.astype(jnp.bfloat16)
    w2t_f32 = w2.T.astype(jnp.float32)                # (G, mid) for the VPU path
    wm_bf = jnp.pad(wm, ((0, 0), (0, out_pad - out_size))).astype(jnp.bfloat16)
    b1_2d = b1.reshape(1, mid).astype(jnp.float32)
    b2_2d = b2.reshape(1, G).astype(jnp.float32)
    bm_2d = jnp.pad(bm, (0, out_pad - out_size)).reshape(1, out_pad).astype(jnp.float32)

    cost = pl.CostEstimate(
        flops=(2 * B * T * H * mid + 2 * B * T * mid * G
               + 2 * B * T * H * G + 2 * B * G * H * out_size),
        transcendentals=B * T * G,
        bytes_accessed=(b_pad * T * H * 2 + b_pad * T * 4
                        + H * mid * 2 + G * mid * 4 + G * H * out_pad * 2
                        + (mid + G + out_pad) * 4 + b_pad * out_pad * 4),
    )

    kernel = functools.partial(attflat_kernel, approx_recip=approx_recip)

    def build(weight_mode):
        def wspec(shape):
            if weight_mode is None:
                return pl.BlockSpec(shape, lambda i: (0, 0))
            return pl.BlockSpec(shape, lambda i: (0, 0), pipeline_mode=weight_mode)

        return pl.pallas_call(
            kernel,
            out_shape=jax.ShapeDtypeStruct((b_pad, 1, out_pad), jnp.float32),
            grid_spec=pltpu.PrefetchScalarGridSpec(
                num_scalar_prefetch=0,
                grid=(num_blocks,),
                in_specs=[
                    pl.BlockSpec((block_b, T, H), lambda i: (i, 0, 0)),   # x (bf16)
                    pl.BlockSpec((block_b, T, 1), lambda i: (i, 0, 0)),   # mask bias
                    wspec((H, mid)),           # W1 (bf16)
                    wspec((1, mid)),           # b1
                    wspec((G, mid)),           # W2^T (f32)
                    wspec((1, G)),             # b2
                    wspec((G * H, out_pad)),   # W_merge (bf16)
                    wspec((1, out_pad)),       # b_merge
                ],
                out_specs=pl.BlockSpec((block_b, 1, out_pad), lambda i: (i, 0, 0)),
            ),
            compiler_params=pltpu.CompilerParams(
                dimension_semantics=("parallel",),
                vmem_limit_bytes=int(budget)),
            cost_estimate=cost,
        )

    args = (x_bf, bias, w1_bf, b1_2d, w2t_f32, b2_2d, wm_bf, bm_2d)
    try:
        # Single-buffer the constant-index weight blocks (their second
        # pipeline buffer is dead VMEM since the index_map is constant).
        out = build(pl.Buffered(1))(*args)
    except Exception:
        # Fallback: default (double-buffered) specs if this jax build rejects
        # pipeline_mode on these BlockSpecs.
        out = build(None)(*args)

    return out.reshape(b_pad, out_pad)[:B, :out_size].astype(out_dtype)


def attflat_reference(x, x_mask, params):
    """Pure-JAX f32 reference mirroring the PyTorch forward."""
    w1, b1, w2, b2, wm, bm = params
    B, T, H = x.shape
    G = w2.shape[1]
    att = jnp.maximum(x @ w1 + b1, 0.0) @ w2 + b2                    # (B, T, G)
    mask = x_mask.reshape(B, T, 1)                                    # squeeze/unsqueeze
    att = jnp.where(mask, -1e9, att)
    att = jax.nn.softmax(att, axis=1)
    att_list = [jnp.sum(att[:, :, i:i + 1] * x, axis=1) for i in range(G)]
    x_atted = jnp.concatenate(att_list, axis=1)
    return x_atted @ wm + bm


if __name__ == "__main__":
    # Small shapes consistent with the module's forward semantics.
    B, T = 2, 8
    hidden_size, flat_mlp_size, flat_glimpses, flat_out_size = 32, 16, 1, 64

    key = jax.random.PRNGKey(0)
    k = jax.random.split(key, 9)
    x = jax.random.normal(k[0], (B, T, hidden_size), dtype=jnp.float32)
    # Mask out the last 3 positions of batch 0 and last 1 of batch 1 (True = pad).
    lens = jnp.array([T - 3, T - 1])
    x_mask = (jnp.arange(T)[None, :] >= lens[:, None]).reshape(B, 1, 1, T)

    scale = 0.05
    w1 = scale * jax.random.normal(k[1], (hidden_size, flat_mlp_size), jnp.float32)
    b1 = scale * jax.random.normal(k[2], (flat_mlp_size,), jnp.float32)
    w2 = scale * jax.random.normal(k[3], (flat_mlp_size, flat_glimpses), jnp.float32)
    b2 = scale * jax.random.normal(k[4], (flat_glimpses,), jnp.float32)
    wm = scale * jax.random.normal(k[5], (hidden_size * flat_glimpses, flat_out_size), jnp.float32)
    bm = scale * jax.random.normal(k[6], (flat_out_size,), jnp.float32)
    params = (w1, b1, w2, b2, wm, bm)

    out = attflat(x, x_mask, params)
    out = jax.block_until_ready(out)

    ref = attflat_reference(x, x_mask, params)
    assert out.shape == (B, flat_out_size)
    # Tolerance relaxed vs the f32 reference: x and the large weights are bf16
    # MXU operands (f32 accumulation) and the softmax uses the EUP approximate
    # reciprocal; observed error is well inside this bound.
    assert jnp.allclose(out, ref, atol=5e-3, rtol=1e-2), (
        "mismatch vs reference, max abs diff = %g" % float(jnp.max(jnp.abs(out - ref))))

    print("KERNEL_OK")
</pallas_src>

<mosaic_0001>
module attributes {stable_mosaic.version = 11 : i64} {
  func.func @attflat_kernel(%arg0: i32, %arg1: memref<2x8x32xbf16, #tpu.memory_space<vmem>>, %arg2: memref<2x8x1xf32, #tpu.memory_space<vmem>>, %arg3: memref<32x16xbf16, #tpu.memory_space<vmem>>, %arg4: memref<1x16xf32, #tpu.memory_space<vmem>>, %arg5: memref<1x16xf32, #tpu.memory_space<vmem>>, %arg6: memref<1x1xf32, #tpu.memory_space<vmem>>, %arg7: memref<32x128xbf16, #tpu.memory_space<vmem>>, %arg8: memref<1x128xf32, #tpu.memory_space<vmem>>, %arg9: memref<2x1x128xf32, #tpu.memory_space<vmem>>) attributes {dimension_semantics = [#tpu.dimension_semantics<parallel>], iteration_bounds = array<i64: 1>, scalar_prefetch = 0 : i64, scratch_operands = 0 : i64, tpu.core_type = #tpu.core_type<tc>, window_params = [{transform_indices = @transform_0, window_bounds = array<i64: 2, 8, 32>}, {transform_indices = @transform_1, window_bounds = array<i64: 2, 8, 1>}, {pipeline_mode = #tpu.pipeline_mode<synchronous>, transform_indices = @transform_2, window_bounds = array<i64: 32, 16>}, {pipeline_mode = #tpu.pipeline_mode<synchronous>, transform_indices = @transform_3, window_bounds = array<i64: 1, 16>}, {pipeline_mode = #tpu.pipeline_mode<synchronous>, transform_indices = @transform_4, window_bounds = array<i64: 1, 16>}, {pipeline_mode = #tpu.pipeline_mode<synchronous>, transform_indices = @transform_5, window_bounds = array<i64: 1, 1>}, {pipeline_mode = #tpu.pipeline_mode<synchronous>, transform_indices = @transform_6, window_bounds = array<i64: 32, 128>}, {pipeline_mode = #tpu.pipeline_mode<synchronous>, transform_indices = @transform_7, window_bounds = array<i64: 1, 128>}, {transform_indices = @transform_8, window_bounds = array<i64: 2, 1, 128>}]} {
    %c0 = arith.constant 0 : index
    %c0_0 = arith.constant 0 : index
    %c0_1 = arith.constant 0 : index
    %0 = vector.load %arg1[%c0, %c0_0, %c0_1] : memref<2x8x32xbf16, #tpu.memory_space<vmem>>, vector<2x8x32xbf16>
    %1 = vector.shape_cast %0 : vector<2x8x32xbf16> to vector<16x32xbf16>
    %c0_2 = arith.constant 0 : index
    %c0_3 = arith.constant 0 : index
    %2 = vector.load %arg3[%c0_2, %c0_3] : memref<32x16xbf16, #tpu.memory_space<vmem>>, vector<32x16xbf16>
    %cst = arith.constant dense<0.000000e+00> : vector<16x16xf32>
    %3 = tpu.matmul %1, %2, %cst {dimension_numbers = #tpu.dot_dimension_numbers<[1], [0], [0], [1], [0, 0, 1, 1], [], []>} : vector<16x32xbf16>, vector<32x16xbf16>, vector<16x16xf32> -> vector<16x16xf32>
    %c0_4 = arith.constant 0 : index
    %c0_5 = arith.constant 0 : index
    %4 = vector.load %arg4[%c0_4, %c0_5] : memref<1x16xf32, #tpu.memory_space<vmem>>, vector<1x16xf32>
    %5 = vector.broadcast %4 : vector<1x16xf32> to vector<16x16xf32>
    %6 = arith.addf %3, %5 : vector<16x16xf32>
    %cst_6 = arith.constant 0.000000e+00 : f32
    %7 = vector.broadcast %cst_6 : f32 to vector<16x16xf32>
    %8 = arith.maximumf %6, %7 : vector<16x16xf32>
    %c0_7 = arith.constant 0 : index
    %c0_8 = arith.constant 0 : index
    %9 = vector.load %arg5[%c0_7, %c0_8] : memref<1x16xf32, #tpu.memory_space<vmem>>, vector<1x16xf32>
    %10 = vector.broadcast %9 : vector<1x16xf32> to vector<16x16xf32>
    %11 = arith.mulf %8, %10 : vector<16x16xf32>
    %cst_9 = arith.constant dense<0.000000e+00> : vector<16xf32>
    %12 = vector.multi_reduction <add>, %11, %cst_9 [1] : vector<16x16xf32> to vector<16xf32>
    %13 = vector.shape_cast %12 : vector<16xf32> to vector<16x1xf32>
    %c0_10 = arith.constant 0 : index
    %c0_11 = arith.constant 0 : index
    %14 = vector.load %arg6[%c0_10, %c0_11] : memref<1x1xf32, #tpu.memory_space<vmem>>, vector<1x1xf32>
    %15 = vector.broadcast %14 : vector<1x1xf32> to vector<16x1xf32>
    %16 = arith.addf %13, %15 : vector<16x1xf32>
    %17 = arith.extf %0 : vector<2x8x32xbf16> to vector<2x8x32xf32>
    %c0_12 = arith.constant 0 : index
    %c0_13 = arith.constant 0 : index
    %c0_14 = arith.constant 0 : index
    %18 = vector.load %arg2[%c0_12, %c0_13, %c0_14] : memref<2x8x1xf32, #tpu.memory_space<vmem>>, vector<2x8x1xf32>
    %cst_15 = arith.constant 0.000000e+00 : f32
    %19 = vector.broadcast %cst_15 : f32 to vector<2x128xf32>
    %20 = vector.shape_cast %16 : vector<16x1xf32> to vector<2x8x1xf32>
    %21 = arith.addf %20, %18 : vector<2x8x1xf32>
    %cst_16 = arith.constant dense<0xFF800000> : vector<2x1xf32>
    %22 = vector.multi_reduction <maximumf>, %21, %cst_16 [1] : vector<2x8x1xf32> to vector<2x1xf32>
    %23 = vector.shape_cast %22 : vector<2x1xf32> to vector<2x1x1xf32>
    %24 = vector.broadcast %23 : vector<2x1x1xf32> to vector<2x8x1xf32>
    %25 = arith.subf %21, %24 : vector<2x8x1xf32>
    %26 = math.exp %25 : vector<2x8x1xf32>
    %cst_17 = arith.constant dense<0.000000e+00> : vector<2x1xf32>
    %27 = vector.multi_reduction <add>, %26, %cst_17 [1] : vector<2x8x1xf32> to vector<2x1xf32>
    %28 = vector.shape_cast %27 : vector<2x1xf32> to vector<2x1x1xf32>
    %29 = tpu.reciprocal %28 {approx = true} : vector<2x1x1xf32> -> vector<2x1x1xf32>
    %30 = vector.broadcast %29 : vector<2x1x1xf32> to vector<2x8x1xf32>
    %31 = arith.mulf %26, %30 : vector<2x8x1xf32>
    %32 = vector.broadcast %31 : vector<2x8x1xf32> to vector<2x8x32xf32>
    %33 = arith.mulf %32, %17 : vector<2x8x32xf32>
    %cst_18 = arith.constant dense<0.000000e+00> : vector<2x32xf32>
    %34 = vector.multi_reduction <add>, %33, %cst_18 [1] : vector<2x8x32xf32> to vector<2x32xf32>
    %35 = arith.truncf %34 : vector<2x32xf32> to vector<2x32xbf16>
    %c0_19 = arith.constant 0 : index
    %c0_20 = arith.constant 0 : index
    %36 = vector.load %arg7[%c0_19, %c0_20] : memref<32x128xbf16, #tpu.memory_space<vmem>>, vector<32x128xbf16>
    %cst_21 = arith.constant dense<0.000000e+00> : vector<2x128xf32>
    %37 = tpu.matmul %35, %36, %cst_21 {dimension_numbers = #tpu.dot_dimension_numbers<[1], [0], [0], [1], [0, 0, 1, 1], [], []>} : vector<2x32xbf16>, vector<32x128xbf16>, vector<2x128xf32> -> vector<2x128xf32>
    %38 = arith.addf %19, %37 : vector<2x128xf32>
    %c0_22 = arith.constant 0 : index
    %c0_23 = arith.constant 0 : index
    %39 = vector.load %arg8[%c0_22, %c0_23] : memref<1x128xf32, #tpu.memory_space<vmem>>, vector<1x128xf32>
    %40 = vector.broadcast %39 : vector<1x128xf32> to vector<2x128xf32>
    %41 = arith.addf %38, %40 : vector<2x128xf32>
    %c0_24 = arith.constant 0 : index
    %c0_25 = arith.constant 0 : index
    %c0_26 = arith.constant 0 : index
    %42 = vector.load %arg9[%c0_24, %c0_25, %c0_26] : memref<2x1x128xf32, #tpu.memory_space<vmem>>, vector<2x1x128xf32>
    %43 = vector.shape_cast %42 : vector<2x1x128xf32> to vector<2x128xf32>
    %44 = vector.shape_cast %41 : vector<2x128xf32> to vector<2x1x128xf32>
    tpu.vector_store %arg9[%c0_24, %c0_25, %c0_26], %44 {strides = array<i32>} : memref<2x1x128xf32, #tpu.memory_space<vmem>>, vector<2x1x128xf32>,
    return
  }
  func.func @transform_0(%arg0: i32) -> (i32, i32, i32) {
    %c0_i32 = arith.constant 0 : i32
    %c0_i32_0 = arith.constant 0 : i32
    %c0_i32_1 = arith.constant 0 : i32
    return %arg0, %c0_i32, %c0_i32_0 : i32, i32, i32
  }
  func.func @transform_1(%arg0: i32) -> (i32, i32, i32) {
    %c0_i32 = arith.constant 0 : i32
    %c0_i32_0 = arith.constant 0 : i32
    %c0_i32_1 = arith.constant 0 : i32
    return %arg0, %c0_i32, %c0_i32_0 : i32, i32, i32
  }
  func.func @transform_2(%arg0: i32) -> (i32, i32) {
    %c0_i32 = arith.constant 0 : i32
    %c0_i32_0 = arith.constant 0 : i32
    %c0_i32_1 = arith.constant 0 : i32
    return %c0_i32, %c0_i32_0 : i32, i32
  }
  func.func @transform_3(%arg0: i32) -> (i32, i32) {
    %c0_i32 = arith.constant 0 : i32
    %c0_i32_0 = arith.constant 0 : i32
    %c0_i32_1 = arith.constant 0 : i32
    return %c0_i32, %c0_i32_0 : i32, i32
  }
  func.func @transform_4(%arg0: i32) -> (i32, i32) {
    %c0_i32 = arith.constant 0 : i32
    %c0_i32_0 = arith.constant 0 : i32
    %c0_i32_1 = arith.constant 0 : i32
    return %c0_i32, %c0_i32_0 : i32, i32
  }
  func.func @transform_5(%arg0: i32) -> (i32, i32) {
    %c0_i32 = arith.constant 0 : i32
    %c0_i32_0 = arith.constant 0 : i32
    %c0_i32_1 = arith.constant 0 : i32
    return %c0_i32, %c0_i32_0 : i32, i32
  }
  func.func @transform_6(%arg0: i32) -> (i32, i32) {
    %c0_i32 = arith.constant 0 : i32
    %c0_i32_0 = arith.constant 0 : i32
    %c0_i32_1 = arith.constant 0 : i32
    return %c0_i32, %c0_i32_0 : i32, i32
  }
  func.func @transform_7(%arg0: i32) -> (i32, i32) {
    %c0_i32 = arith.constant 0 : i32
    %c0_i32_0 = arith.constant 0 : i32
    %c0_i32_1 = arith.constant 0 : i32
    return %c0_i32, %c0_i32_0 : i32, i32
  }
  func.func @transform_8(%arg0: i32) -> (i32, i32, i32) {
    %c0_i32 = arith.constant 0 : i32
    %c0_i32_0 = arith.constant 0 : i32
    %c0_i32_1 = arith.constant 0 : i32
    return %arg0, %c0_i32, %c0_i32_0 : i32, i32, i32
  }
}

module attributes {stable_mosaic.version = 11 : i64} {
  func.func @attflat_kernel(%arg0: i32, %arg1: memref<2x8x32xbf16, #tpu.memory_space<vmem>>, %arg2: memref<2x8x1xf32, #tpu.memory_space<vmem>>, %arg3: memref<32x16xbf16, #tpu.memory_space<vmem>>, %arg4: memref<1x16xf32, #tpu.memory_space<vmem>>, %arg5: memref<1x16xf32, #tpu.memory_space<vmem>>, %arg6: memref<1x1xf32, #tpu.memory_space<vmem>>, %arg7: memref<32x128xbf16, #tpu.memory_space<vmem>>, %arg8: memref<1x128xf32, #tpu.memory_space<vmem>>, %arg9: memref<2x1x128xf32, #tpu.memory_space<vmem>>) attributes {dimension_semantics = [#tpu.dimension_semantics<parallel>], iteration_bounds = array<i64: 1>, scalar_prefetch = 0 : i64, scratch_operands = 0 : i64, tpu.core_type = #tpu.core_type<tc>, window_params = [{transform_indices = @transform_0, window_bounds = array<i64: 2, 8, 32>}, {transform_indices = @transform_1, window_bounds = array<i64: 2, 8, 1>}, {pipeline_mode = #tpu.pipeline_mode<synchronous>, transform_indices = @transform_2, window_bounds = array<i64: 32, 16>}, {pipeline_mode = #tpu.pipeline_mode<synchronous>, transform_indices = @transform_3, window_bounds = array<i64: 1, 16>}, {pipeline_mode = #tpu.pipeline_mode<synchronous>, transform_indices = @transform_4, window_bounds = array<i64: 1, 16>}, {pipeline_mode = #tpu.pipeline_mode<synchronous>, transform_indices = @transform_5, window_bounds = array<i64: 1, 1>}, {pipeline_mode = #tpu.pipeline_mode<synchronous>, transform_indices = @transform_6, window_bounds = array<i64: 32, 128>}, {pipeline_mode = #tpu.pipeline_mode<synchronous>, transform_indices = @transform_7, window_bounds = array<i64: 1, 128>}, {transform_indices = @transform_8, window_bounds = array<i64: 2, 1, 128>}]} {
    %c0 = arith.constant 0 : index
    %c0_0 = arith.constant 0 : index
    %c0_1 = arith.constant 0 : index
    %0 = vector.load %arg1[%c0, %c0_0, %c0_1] : memref<2x8x32xbf16, #tpu.memory_space<vmem>>, vector<2x8x32xbf16>
    %1 = vector.shape_cast %0 : vector<2x8x32xbf16> to vector<16x32xbf16>
    %c0_2 = arith.constant 0 : index
    %c0_3 = arith.constant 0 : index
    %2 = vector.load %arg3[%c0_2, %c0_3] : memref<32x16xbf16, #tpu.memory_space<vmem>>, vector<32x16xbf16>
    %cst = arith.constant dense<0.000000e+00> : vector<16x16xf32>
    %3 = tpu.matmul %1, %2, %cst {dimension_numbers = #tpu.dot_dimension_numbers<[1], [0], [0], [1], [0, 0, 1, 1], [], []>} : vector<16x32xbf16>, vector<32x16xbf16>, vector<16x16xf32> -> vector<16x16xf32>
    %c0_4 = arith.constant 0 : index
    %c0_5 = arith.constant 0 : index
    %4 = vector.load %arg4[%c0_4, %c0_5] : memref<1x16xf32, #tpu.memory_space<vmem>>, vector<1x16xf32>
    %5 = vector.broadcast %4 : vector<1x16xf32> to vector<16x16xf32>
    %6 = arith.addf %3, %5 : vector<16x16xf32>
    %cst_6 = arith.constant 0.000000e+00 : f32
    %7 = vector.broadcast %cst_6 : f32 to vector<16x16xf32>
    %8 = arith.maximumf %6, %7 : vector<16x16xf32>
    %c0_7 = arith.constant 0 : index
    %c0_8 = arith.constant 0 : index
    %9 = vector.load %arg5[%c0_7, %c0_8] : memref<1x16xf32, #tpu.memory_space<vmem>>, vector<1x16xf32>
    %10 = vector.broadcast %9 : vector<1x16xf32> to vector<16x16xf32>
    %11 = arith.mulf %8, %10 : vector<16x16xf32>
    %cst_9 = arith.constant dense<0.000000e+00> : vector<16xf32>
    %12 = vector.multi_reduction <add>, %11, %cst_9 [1] : vector<16x16xf32> to vector<16xf32>
    %13 = vector.shape_cast %12 : vector<16xf32> to vector<16x1xf32>
    %c0_10 = arith.constant 0 : index
    %c0_11 = arith.constant 0 : index
    %14 = vector.load %arg6[%c0_10, %c0_11] : memref<1x1xf32, #tpu.memory_space<vmem>>, vector<1x1xf32>
    %15 = vector.broadcast %14 : vector<1x1xf32> to vector<16x1xf32>
    %16 = arith.addf %13, %15 : vector<16x1xf32>
    %17 = arith.extf %0 : vector<2x8x32xbf16> to vector<2x8x32xf32>
    %c0_12 = arith.constant 0 : index
    %c0_13 = arith.constant 0 : index
    %c0_14 = arith.constant 0 : index
    %18 = vector.load %arg2[%c0_12, %c0_13, %c0_14] : memref<2x8x1xf32, #tpu.memory_space<vmem>>, vector<2x8x1xf32>
    %cst_15 = arith.constant 0.000000e+00 : f32
    %19 = vector.broadcast %cst_15 : f32 to vector<2x128xf32>
    %20 = vector.shape_cast %16 : vector<16x1xf32> to vector<2x8x1xf32>
    %21 = arith.addf %20, %18 : vector<2x8x1xf32>
    %cst_16 = arith.constant dense<0xFF800000> : vector<2x1xf32>
    %22 = vector.multi_reduction <maximumf>, %21, %cst_16 [1] : vector<2x8x1xf32> to vector<2x1xf32>
    %23 = vector.shape_cast %22 : vector<2x1xf32> to vector<2x1x1xf32>
    %24 = vector.broadcast %23 : vector<2x1x1xf32> to vector<2x8x1xf32>
    %25 = arith.subf %21, %24 : vector<2x8x1xf32>
    %26 = math.exp %25 : vector<2x8x1xf32>
    %cst_17 = arith.constant dense<0.000000e+00> : vector<2x1xf32>
    %27 = vector.multi_reduction <add>, %26, %cst_17 [1] : vector<2x8x1xf32> to vector<2x1xf32>
    %28 = vector.shape_cast %27 : vector<2x1xf32> to vector<2x1x1xf32>
    %29 = tpu.reciprocal %28 {approx = true} : vector<2x1x1xf32> -> vector<2x1x1xf32>
    %30 = vector.broadcast %29 : vector<2x1x1xf32> to vector<2x8x1xf32>
    %31 = arith.mulf %26, %30 : vector<2x8x1xf32>
    %32 = vector.broadcast %31 : vector<2x8x1xf32> to vector<2x8x32xf32>
    %33 = arith.mulf %32, %17 : vector<2x8x32xf32>
    %cst_18 = arith.constant dense<0.000000e+00> : vector<2x32xf32>
    %34 = vector.multi_reduction <add>, %33, %cst_18 [1] : vector<2x8x32xf32> to vector<2x32xf32>
    %35 = arith.truncf %34 : vector<2x32xf32> to vector<2x32xbf16>
    %c0_19 = arith.constant 0 : index
    %c0_20 = arith.constant 0 : index
    %36 = vector.load %arg7[%c0_19, %c0_20] : memref<32x128xbf16, #tpu.memory_space<vmem>>, vector<32x128xbf16>
    %cst_21 = arith.constant dense<0.000000e+00> : vector<2x128xf32>
    %37 = tpu.matmul %35, %36, %cst_21 {dimension_numbers = #tpu.dot_dimension_numbers<[1], [0], [0], [1], [0, 0, 1, 1], [], []>} : vector<2x32xbf16>, vector<32x128xbf16>, vector<2x128xf32> -> vector<2x128xf32>
    %38 = arith.addf %19, %37 : vector<2x128xf32>
    %c0_22 = arith.constant 0 : index
    %c0_23 = arith.constant 0 : index
    %39 = vector.load %arg8[%c0_22, %c0_23] : memref<1x128xf32, #tpu.memory_space<vmem>>, vector<1x128xf32>
    %40 = vector.broadcast %39 : vector<1x128xf32> to vector<2x128xf32>
    %41 = arith.addf %38, %40 : vector<2x128xf32>
    %c0_24 = arith.constant 0 : index
    %c0_25 = arith.constant 0 : index
    %c0_26 = arith.constant 0 : index
    %42 = vector.load %arg9[%c0_24, %c0_25, %c0_26] : memref<2x1x128xf32, #tpu.memory_space<vmem>>, vector<2x1x128xf32>
    %43 = vector.shape_cast %42 : vector<2x1x128xf32> to vector<2x128xf32>
    %44 = vector.shape_cast %41 : vector<2x128xf32> to vector<2x1x128xf32>
    tpu.vector_store %arg9[%c0_24, %c0_25, %c0_26], %44 {strides = array<i32>} : memref<2x1x128xf32, #tpu.memory_space<vmem>>, vector<2x1x128xf32>,
    return
  }
  func.func @transform_0(%arg0: i32) -> (i32, i32, i32) {
    %c0_i32 = arith.constant 0 : i32
    %c0_i32_0 = arith.constant 0 : i32
    %c0_i32_1 = arith.constant 0 : i32
    return %arg0, %c0_i32, %c0_i32_0 : i32, i32, i32
  }
  func.func @transform_1(%arg0: i32) -> (i32, i32, i32) {
    %c0_i32 = arith.constant 0 : i32
    %c0_i32_0 = arith.constant 0 : i32
    %c0_i32_1 = arith.constant 0 : i32
    return %arg0, %c0_i32, %c0_i32_0 : i32, i32, i32
  }
  func.func @transform_2(%arg0: i32) -> (i32, i32) {
    %c0_i32 = arith.constant 0 : i32
    %c0_i32_0 = arith.constant 0 : i32
    %c0_i32_1 = arith.constant 0 : i32
    return %c0_i32, %c0_i32_0 : i32, i32
  }
  func.func @transform_3(%arg0: i32) -> (i32, i32) {
    %c0_i32 = arith.constant 0 : i32
    %c0_i32_0 = arith.constant 0 : i32
    %c0_i32_1 = arith.constant 0 : i32
    return %c0_i32, %c0_i32_0 : i32, i32
  }
  func.func @transform_4(%arg0: i32) -> (i32, i32) {
    %c0_i32 = arith.constant 0 : i32
    %c0_i32_0 = arith.constant 0 : i32
    %c0_i32_1 = arith.constant 0 : i32
    return %c0_i32, %c0_i32_0 : i32, i32
  }
  func.func @transform_5(%arg0: i32) -> (i32, i32) {
    %c0_i32 = arith.constant 0 : i32
    %c0_i32_0 = arith.constant 0 : i32
    %c0_i32_1 = arith.constant 0 : i32
    return %c0_i32, %c0_i32_0 : i32, i32
  }
  func.func @transform_6(%arg0: i32) -> (i32, i32) {
    %c0_i32 = arith.constant 0 : i32
    %c0_i32_0 = arith.constant 0 : i32
    %c0_i32_1 = arith.constant 0 : i32
    return %c0_i32, %c0_i32_0 : i32, i32
  }
  func.func @transform_7(%arg0: i32) -> (i32, i32) {
    %c0_i32 = arith.constant 0 : i32
    %c0_i32_0 = arith.constant 0 : i32
    %c0_i32_1 = arith.constant 0 : i32
    return %c0_i32, %c0_i32_0 : i32, i32
  }
  func.func @transform_8(%arg0: i32) -> (i32, i32, i32) {
    %c0_i32 = arith.constant 0 : i32
    %c0_i32_0 = arith.constant 0 : i32
    %c0_i32_1 = arith.constant 0 : i32
    return %arg0, %c0_i32, %c0_i32_0 : i32, i32, i32
  }
}

</mosaic_0001>

<bundles_post_ra>
// kernel: tpu_custom_call.1
= control target key start
LH: loop header
LB: loop body
LE: loop exit
PB: predicated region body
PF: predicated region fallthrough
CT: control target
= control target key end

     0   :  { %s511_s0 = inlined_call_operand.vmem [shape: bf16[2,8,32], index: 0, kind: input, shape index: {}]   ;;  %s512_s1 = inlined_call_operand.vmem [shape: f32[2,8,1], index: 1, kind: input, shape index: {}]   ;;  %s513_s2 = inlined_call_operand.vmem [shape: bf16[32,16], index: 2, kind: input, shape index: {}]   ;;  %s514_s3 = inlined_call_operand.vmem [shape: f32[1,16], index: 3, kind: input, shape index: {}]   ;;  %s515_s4 = inlined_call_operand.vmem [shape: f32[1,16], index: 4, kind: input, shape index: {}]   ;;  %s516_s5 = inlined_call_operand.<no memory space> [shape: f32[1,1], index: 5, kind: input, shape index: {}]   ;;  %s517_s6 = inlined_call_operand.vmem [shape: bf16[32,128], index: 6, kind: input, shape index: {}]   ;;  %s518_s7 = inlined_call_operand.vmem [shape: f32[1,128], index: 7, kind: input, shape index: {}]   ;;  %s519_s8 = inlined_call_operand.hbm [shape: f32[2,1,128], index: 8, kind: output, shape index: {}]  }
   0x1   :  { %v13_v0 = vstv %s516_s5 }
   0x2   :  { %14 = vst [vmem:[#allocation2] sm:$0x1] %v13_v0 }
   0x3   :  { %v368_v1 = vld [vmem:[%s513_s2 + $0x8] sm:$0xff]   ;;  %v404_v2 = vmov 0.0   ;;  %v369_v3 = vld [vmem:[%s513_s2] sm:$0xff]   ;;  %vm405_vm0 = vmmov 0  }
   0x4   :  { %343 = vmatprep.subr.bf16.mxu0 %v404_v2  ;;  %351 = vmatprep.subr.bf16.mxu1 %v404_v2  ;;  %v471_v4 = vld [vmem:[%s511_s0] sm:$0xff]  }
   0x5   :  { %344 = vmatpush3.bf16.msra.mxu0 %v368_v1  ;;  %347 = vmatprep.mubr.msk.bf16.mxu0 %vm405_vm0, %v404_v2 }
   0x6   :  { %345 = vmatprep.subr.bf16.mxu0 %v404_v2  ;;  %355 = vmatprep.mubr.msk.bf16.mxu1 %vm405_vm0, %v404_v2 }
   0x7   :  { %15 = vsyncpa [#allocation4], 0  ;;  %vm63_vm1 = vcmask 261120   ;;  %v324_v5 = vld [vmem:[%s514_s3] ss:$0 sm:$0xff]  ;;  %vm119_vm2 = vcmask 130048  }
   0x8   :  { %v329_v9 = vld [vmem:[%s515_s4] ss:$0 sm:$0xff]  ;;  %v406_v19 = vmov 0   ;;  %vm141_vm3 = vcmask 7168   ;;  %v138_v25 = vld [vmem:[%s512_s1 + $0x8] sm:$0xff]  ;;  %vm223_vm4 = vcmask 1041409  }
   0x9   :  { %346 = vmatpush3.bf16.msra.mxu0 %v369_v3  ;;  %366 = vset.pattern.permute.xlu1 %v406_v19  ;;  %v330_v20 = vld [vmem:[#allocation2] ss:$0 sm:$0xff]  ;;  %s408_s20 = smov [#allocation3]  }
   0xa   :  { %367 = vset.pattern.permute.xlu0 %v406_v19  ;;  %v137_v21 = vld [vmem:[%s512_s1] sm:$0xff]  ;;  %s313_s21 = sshll.u32 %s408_s20, 4  ;;  %s314_s21 = int_to_ptr.vmem [resolvable:$true] %s313_s21 }
   0xb   :  { %s382_s22 = scalar_lea.vmem %s314_s21, 32  ;;  %p387_p1 = scmp.lt.s32.totalorder %s314_s21, %s314_s21 }
   0xc   :  { %348 = vmatmul.mubr.msk.bf16.vlgmr.msra.gmra.mxu0 %vm63_vm1, %v471_v4  ;;  %p383_p0 = scmp.ne.s32.totalorder %s314_s21, %s382_s22  ;;  %p388_p2 = scmp.lt.s32.totalorder %s382_s22, %s382_s22 }
   0xe   :  { %p389_p3 = por %p388_p2, %p387_p1 }
  0x10   :  { %p390_p4 = pnand %p389_p3, %p383_p0 }
  0xcc   :  { %v101_v6 = vpop.f32.mrf.mxu0 }
  0xcd   :  { %v102_v7 = vadd.f32 %v324_v5, %v101_v6  ;;  %v372_v6 = vld [vmem:[%s517_s6] sm:$0xff]  }
  0xce   :  { %v349_v8 = vpop.f32.mrf.mxu0 }
  0xcf   :  { %v108_v10 = vmax.f32 %v102_v7, 0.0  ;;  %v135_v7 = vunpack.c.l.bf16 %v471_v4 }
  0xd0   :  { %v104_v11 = vpop.f32.mrf.mxu0 }
  0xd1   :  { %v105_v12 = vadd.f32 %v324_v5, %v104_v11  ;;  %v117_v13 = vmul.f32 %v329_v9, %v108_v10  ;;  %v371_v5 = vld [vmem:[%s517_s6 + $0x8] sm:$0xff]   ;;  %v136_v10 = vunpack.c.h.bf16 %v471_v4 }
  0xd2   :  { %v350_v14 = vpop.f32.mrf.mxu0  ;;  %352 = vmatpush3.bf16.msra.mxu1 %v371_v5 }
  0xd3   :  { %v109_v15 = vmax.f32 %v105_v12, 0.0  ;;  %v120_v16 = vsel %vm119_vm2, %v117_v13, 0.0  ;;  %353 = vmatprep.subr.bf16.mxu1 %v404_v2 }
  0xd4   :  { %121 = vadd.xlane.f32.xlu0 %v120_v16 }
  0xd5   :  { %v118_v17 = vmul.f32 %v329_v9, %v109_v15 }
  0xd6   :  { %354 = vmatpush3.bf16.msra.mxu1 %v372_v6 }
  0xd7   :  { %v123_v18 = vsel %vm119_vm2, %v118_v17, 0.0 }
  0xd8   :  { %124 = vadd.xlane.f32.xlu0 %v123_v18 }
 0x15d   :  { %v122_v22 = vpop.xlane.xlu0 %121 }
 0x15e   :  { %v133_v23 = vadd.f32 %v330_v20, %v122_v22 }
 0x160   :  { %v139_v24 = vadd.f32 %v137_v21, %v133_v23 }
 0x161   :  { %v125_v26 = vpop.xlane.xlu0 %124 }
 0x162   :  { %v142_v27 = vsel %vm141_vm3, %v139_v24, -inf  ;;  %v134_v28 = vadd.f32 %v330_v20, %v125_v26 }
 0x163   :  { %v143_v29 = vrot.slane %v142_v27, 4 }
 0x164   :  { %v140_v30 = vadd.f32 %v138_v25, %v134_v28 }
 0x165   :  { %v144_v31 = vmax.f32 %v142_v27, %v143_v29 }
 0x166   :  { %v149_v32 = vsel %vm141_vm3, %v140_v30, -inf }
 0x167   :  { %v145_v33 = vrot.slane %v144_v31, 2  ;;  %v150_v34 = vrot.slane %v149_v32, 4 }
 0x169   :  { %v146_v35 = vmax.f32 %v144_v31, %v145_v33  ;;  %v151_v36 = vmax.f32 %v149_v32, %v150_v34  ;;  %v407_v31 = vmov 1966171168   ;;  %v285_v33 = vlaneseq }
 0x16a   :  { %v283_v32 = vunpack.c.l.s4 %v407_v31 }
 0x16b   :  { %v147_v37 = vrot.slane %v146_v35, 1  ;;  %v152_v38 = vrot.slane %v151_v36, 2 }
 0x16c   :  { %v284_v34 = vunpack.c.0.s8 %v283_v32 }
 0x16d   :  { %v148_v39 = vmax.f32 %v146_v35, %v147_v37  ;;  %v153_v40 = vmax.f32 %v151_v36, %v152_v38  ;;  %v286_v35 = vshrl.u32 %v285_v33, 7  ;;  %v331_v36 = vld [vmem:[%s518_s7] ss:$0 sm:$0xff] }
 0x16f   :  { %v156_v41 = vsub.f32 %v139_v24, %v148_v39  ;;  %v154_v42 = vrot.slane %v153_v40, 1  ;;  %v287_v37 = vsub.s32 %v284_v34, %v286_v35 }
 0x171   :  { %v158_v43 = vmul.f32 1.442695, %v156_v41  ;;  %v155_v44 = vmax.f32 %v153_v40, %v154_v42 }
 0x173   :  { %374 = vpow2.f32 %v158_v43  ;;  %v157_v45 = vsub.f32 %v140_v30, %v155_v44 }
 0x175   :  { %v160_v46 = vmul.f32 1.442695, %v157_v45 }
 0x177   :  { %376 = vpow2.f32 %v160_v46 }
 0x180   :  { %v375_v47 = vpop.eup %374 }
 0x181   :  { %v162_v48 = vsel %vm141_vm3, %v375_v47, 0.0 }
 0x182   :  { %v163_v49 = vrot.slane %v162_v48, 4 }
 0x184   :  { %v377_v50 = vpop.eup %376  ;;  %v164_v51 = vadd.f32 %v163_v49, %v162_v48 }
 0x185   :  { %v169_v52 = vsel %vm141_vm3, %v377_v50, 0.0 }
 0x186   :  { %v165_v53 = vrot.slane %v164_v51, 2  ;;  %v170_v54 = vrot.slane %v169_v52, 4 }
 0x188   :  { %v166_v55 = vadd.f32 %v165_v53, %v164_v51  ;;  %v171_v56 = vadd.f32 %v170_v54, %v169_v52 }
 0x18a   :  { %v167_v57 = vrot.slane %v166_v55, 1  ;;  %v172_v58 = vrot.slane %v171_v56, 2 }
 0x18c   :  { %v168_v59 = vadd.f32 %v167_v57, %v166_v55  ;;  %v173_v60 = vadd.f32 %v172_v58, %v171_v56 }
 0x18e   :  { %378 = vrcp.f32 %v168_v59  ;;  %v174_v61 = vrot.slane %v173_v60, 1 }
 0x190   :  { %v175_v62 = vadd.f32 %v174_v61, %v173_v60 }
 0x192   :  { %380 = vrcp.f32 %v175_v62 }
 0x19b   :  { %v379_v63 = vpop.eup %378 }
 0x19c   :  { %v178_v0 = vmul.f32 %v379_v63, %v375_v47 }
 0x19e   :  { %182 = vperm.xlu1 %366, %v178_v0  }
 0x19f   :  { %v381_v1 = vpop.eup %380 }
 0x1a0   :  { %v179_v3 = vmul.f32 %v381_v1, %v377_v50 }
 0x1a2   :  { %187 = vperm.xlu1 %366, %v179_v3  }
 0x219   :  { %v183_v8 = vpop.permute.xlu1 %182 }
 0x21a   :  { %v190_v9 = vmul.f32 %v183_v8, %v135_v7 }
 0x21c   :  { %v192_v11 = vsel %vm63_vm1, %v190_v9, 0.0 }
 0x21d   :  { %v193_v12 = vrot.slane %v192_v11, 4  ;;  %v188_v13 = vpop.permute.xlu1 %187 }
 0x21e   :  { %v191_v14 = vmul.f32 %v188_v13, %v136_v10 }
 0x21f   :  { %v194_v15 = vadd.f32 %v193_v12, %v192_v11 }
 0x220   :  { %v199_v16 = vsel %vm63_vm1, %v191_v14, 0.0 }
 0x221   :  { %v195_v2 = vrot.slane %v194_v15, 2  ;;  %v200_v17 = vrot.slane %v199_v16, 4 }
 0x223   :  { %v196_v18 = vadd.f32 %v195_v2, %v194_v15  ;;  %v201_v19 = vadd.f32 %v200_v17, %v199_v16 }
 0x225   :  { %v197_v20 = vrot.slane %v196_v18, 1  ;;  %v202_v21 = vrot.slane %v201_v19, 2 }
 0x227   :  { %v198_v22 = vadd.f32 %v197_v20, %v196_v18  ;;  %v203_v23 = vadd.f32 %v202_v21, %v201_v19 }
 0x229   :  { %v204_v24 = vrot.slane %v203_v23, 1  ;;  %v206_v25 = vpack.c.bf16 %v198_v22, %v198_v22 }
 0x22b   :  { %v205_v26 = vadd.f32 %v204_v24, %v203_v23  ;;  %v221_v27 = vunpack.c.l.b16 %v206_v25 }
 0x22d   :  { %v207_v4 = vpack.c.bf16 %v205_v26, %v205_v26 }
 0x22f   :  { %v222_v28 = vunpack.c.l.b16 %v207_v4 }
 0x231   :  { %v224_v29 = vsel %vm223_vm4, %v222_v28, %v221_v27 }
 0x232   :  { %v225_v30 = vpack.c.b16 %v224_v29, %v224_v29 }
 0x234   :  { %356 = vmatmul.mubr.msk.bf16.vlgmr.msra.gmra.mxu1 %vm63_vm1, %v225_v30 }
 0x2f4   :  { %v275_v38 = vpop.f32.mrf.mxu1 }
 0x2f5   :  { %v276_v39 = vadd.f32 %v331_v36, %v275_v38 }
 0x2f6   :  { %v357_v40 = vpop.f32.mrf.mxu1 }
 0x2f7   :  { %v288_v41 = vrot.slane %v276_v39, %v287_v37 }
 0x2f8   :  { %v278_v42 = vpop.f32.mrf.mxu1 }
 0x2f9   :  { %v289_v43 = vcombine.high %v288_v41, %v288_v41  ;;  %335 = vst.sshfl [vmem:[#allocation3] sm:$0x1 pattern:$0x73625140] %v288_v41 }
 0x2fa   :  { %v358_v44 = vpop.f32.mrf.mxu1 }
 0x2fb   :  { %336 = vst.sshfl [vmem:[#allocation3 + $0x1] sm:$0x1 pattern:$0x73625140] %v289_v43 }
 0x2fc   :  { %393 = shalt.err (!%p390_p4)
}
 0x2fd   :  { %s409_s7 = smov 16   ;;  %s410_s23 = smov 1  }
 0x2fe   :  { %319 = dma.vmem_to_hbm [thread:$0]  %s314_s21, 32, %s519_s8, [#allocation4], %s409_s7, %s409_s7, %s410_s23  }
 0x2ff   :  { %402 = dma.done.wait [#allocation4], 32  }
 0x300   :  { %403 = vsyncadd [#allocation4], 4294967264 }
 0x301   :  { %323 = vsyncpa [#allocation4], 1 }

// kernel: tpu_custom_call.1
= control target key start
LH: loop header
LB: loop body
LE: loop exit
PB: predicated region body
PF: predicated region fallthrough
CT: control target
= control target key end

     0   :  { %s511_s0 = inlined_call_operand.vmem [shape: bf16[2,8,32], index: 0, kind: input, shape index: {}]   ;;  %s512_s1 = inlined_call_operand.vmem [shape: f32[2,8,1], index: 1, kind: input, shape index: {}]   ;;  %s513_s2 = inlined_call_operand.vmem [shape: bf16[32,16], index: 2, kind: input, shape index: {}]   ;;  %s514_s3 = inlined_call_operand.vmem [shape: f32[1,16], index: 3, kind: input, shape index: {}]   ;;  %s515_s4 = inlined_call_operand.vmem [shape: f32[1,16], index: 4, kind: input, shape index: {}]   ;;  %s516_s5 = inlined_call_operand.<no memory space> [shape: f32[1,1], index: 5, kind: input, shape index: {}]   ;;  %s517_s6 = inlined_call_operand.vmem [shape: bf16[32,128], index: 6, kind: input, shape index: {}]   ;;  %s518_s7 = inlined_call_operand.vmem [shape: f32[1,128], index: 7, kind: input, shape index: {}]   ;;  %s519_s8 = inlined_call_operand.hbm [shape: f32[2,1,128], index: 8, kind: output, shape index: {}]  }
   0x1   :  { %v13_v0 = vstv %s516_s5 }
   0x2   :  { %14 = vst [vmem:[#allocation2] sm:$0x1] %v13_v0 }
   0x3   :  { %v368_v1 = vld [vmem:[%s513_s2 + $0x8] sm:$0xff]   ;;  %v404_v2 = vmov 0.0   ;;  %v369_v3 = vld [vmem:[%s513_s2] sm:$0xff]   ;;  %vm405_vm0 = vmmov 0  }
   0x4   :  { %343 = vmatprep.subr.bf16.mxu0 %v404_v2  ;;  %351 = vmatprep.subr.bf16.mxu1 %v404_v2  ;;  %v471_v4 = vld [vmem:[%s511_s0] sm:$0xff]  }
   0x5   :  { %344 = vmatpush3.bf16.msra.mxu0 %v368_v1  ;;  %347 = vmatprep.mubr.msk.bf16.mxu0 %vm405_vm0, %v404_v2 }
   0x6   :  { %345 = vmatprep.subr.bf16.mxu0 %v404_v2  ;;  %355 = vmatprep.mubr.msk.bf16.mxu1 %vm405_vm0, %v404_v2 }
   0x7   :  { %15 = vsyncpa [#allocation4], 0  ;;  %vm63_vm1 = vcmask 261120   ;;  %v324_v5 = vld [vmem:[%s514_s3] ss:$0 sm:$0xff]  ;;  %vm119_vm2 = vcmask 130048  }
   0x8   :  { %v329_v9 = vld [vmem:[%s515_s4] ss:$0 sm:$0xff]  ;;  %v406_v19 = vmov 0   ;;  %vm141_vm3 = vcmask 7168   ;;  %v138_v25 = vld [vmem:[%s512_s1 + $0x8] sm:$0xff]  ;;  %vm223_vm4 = vcmask 1041409  }
   0x9   :  { %346 = vmatpush3.bf16.msra.mxu0 %v369_v3  ;;  %366 = vset.pattern.permute.xlu1 %v406_v19  ;;  %v330_v20 = vld [vmem:[#allocation2] ss:$0 sm:$0xff]  ;;  %s408_s20 = smov [#allocation3]  }
   0xa   :  { %367 = vset.pattern.permute.xlu0 %v406_v19  ;;  %v137_v21 = vld [vmem:[%s512_s1] sm:$0xff]  ;;  %s313_s21 = sshll.u32 %s408_s20, 4  ;;  %s314_s21 = int_to_ptr.vmem [resolvable:$true] %s313_s21 }
   0xb   :  { %s382_s22 = scalar_lea.vmem %s314_s21, 32  ;;  %p387_p1 = scmp.lt.s32.totalorder %s314_s21, %s314_s21 }
   0xc   :  { %348 = vmatmul.mubr.msk.bf16.vlgmr.msra.gmra.mxu0 %vm63_vm1, %v471_v4  ;;  %p383_p0 = scmp.ne.s32.totalorder %s314_s21, %s382_s22  ;;  %p388_p2 = scmp.lt.s32.totalorder %s382_s22, %s382_s22 }
   0xe   :  { %p389_p3 = por %p388_p2, %p387_p1 }
  0x10   :  { %p390_p4 = pnand %p389_p3, %p383_p0 }
  0xcc   :  { %v101_v6 = vpop.f32.mrf.mxu0 }
  0xcd   :  { %v102_v7 = vadd.f32 %v324_v5, %v101_v6  ;;  %v372_v6 = vld [vmem:[%s517_s6] sm:$0xff]  }
  0xce   :  { %v349_v8 = vpop.f32.mrf.mxu0 }
  0xcf   :  { %v108_v10 = vmax.f32 %v102_v7, 0.0  ;;  %v135_v7 = vunpack.c.l.bf16 %v471_v4 }
  0xd0   :  { %v104_v11 = vpop.f32.mrf.mxu0 }
  0xd1   :  { %v105_v12 = vadd.f32 %v324_v5, %v104_v11  ;;  %v117_v13 = vmul.f32 %v329_v9, %v108_v10  ;;  %v371_v5 = vld [vmem:[%s517_s6 + $0x8] sm:$0xff]   ;;  %v136_v10 = vunpack.c.h.bf16 %v471_v4 }
  0xd2   :  { %v350_v14 = vpop.f32.mrf.mxu0  ;;  %352 = vmatpush3.bf16.msra.mxu1 %v371_v5 }
  0xd3   :  { %v109_v15 = vmax.f32 %v105_v12, 0.0  ;;  %v120_v16 = vsel %vm119_vm2, %v117_v13, 0.0  ;;  %353 = vmatprep.subr.bf16.mxu1 %v404_v2 }
  0xd4   :  { %121 = vadd.xlane.f32.xlu0 %v120_v16 }
  0xd5   :  { %v118_v17 = vmul.f32 %v329_v9, %v109_v15 }
  0xd6   :  { %354 = vmatpush3.bf16.msra.mxu1 %v372_v6 }
  0xd7   :  { %v123_v18 = vsel %vm119_vm2, %v118_v17, 0.0 }
  0xd8   :  { %124 = vadd.xlane.f32.xlu0 %v123_v18 }
 0x15d   :  { %v122_v22 = vpop.xlane.xlu0 %121 }
 0x15e   :  { %v133_v23 = vadd.f32 %v330_v20, %v122_v22 }
 0x160   :  { %v139_v24 = vadd.f32 %v137_v21, %v133_v23 }
 0x161   :  { %v125_v26 = vpop.xlane.xlu0 %124 }
 0x162   :  { %v142_v27 = vsel %vm141_vm3, %v139_v24, -inf  ;;  %v134_v28 = vadd.f32 %v330_v20, %v125_v26 }
 0x163   :  { %v143_v29 = vrot.slane %v142_v27, 4 }
 0x164   :  { %v140_v30 = vadd.f32 %v138_v25, %v134_v28 }
 0x165   :  { %v144_v31 = vmax.f32 %v142_v27, %v143_v29 }
 0x166   :  { %v149_v32 = vsel %vm141_vm3, %v140_v30, -inf }
 0x167   :  { %v145_v33 = vrot.slane %v144_v31, 2  ;;  %v150_v34 = vrot.slane %v149_v32, 4 }
 0x169   :  { %v146_v35 = vmax.f32 %v144_v31, %v145_v33  ;;  %v151_v36 = vmax.f32 %v149_v32, %v150_v34  ;;  %v407_v31 = vmov 1966171168   ;;  %v285_v33 = vlaneseq }
 0x16a   :  { %v283_v32 = vunpack.c.l.s4 %v407_v31 }
 0x16b   :  { %v147_v37 = vrot.slane %v146_v35, 1  ;;  %v152_v38 = vrot.slane %v151_v36, 2 }
 0x16c   :  { %v284_v34 = vunpack.c.0.s8 %v283_v32 }
 0x16d   :  { %v148_v39 = vmax.f32 %v146_v35, %v147_v37  ;;  %v153_v40 = vmax.f32 %v151_v36, %v152_v38  ;;  %v286_v35 = vshrl.u32 %v285_v33, 7  ;;  %v331_v36 = vld [vmem:[%s518_s7] ss:$0 sm:$0xff] }
 0x16f   :  { %v156_v41 = vsub.f32 %v139_v24, %v148_v39  ;;  %v154_v42 = vrot.slane %v153_v40, 1  ;;  %v287_v37 = vsub.s32 %v284_v34, %v286_v35 }
 0x171   :  { %v158_v43 = vmul.f32 1.442695, %v156_v41  ;;  %v155_v44 = vmax.f32 %v153_v40, %v154_v42 }
 0x173   :  { %374 = vpow2.f32 %v158_v43  ;;  %v157_v45 = vsub.f32 %v140_v30, %v155_v44 }
 0x175   :  { %v160_v46 = vmul.f32 1.442695, %v157_v45 }
 0x177   :  { %376 = vpow2.f32 %v160_v46 }
 0x180   :  { %v375_v47 = vpop.eup %374 }
 0x181   :  { %v162_v48 = vsel %vm141_vm3, %v375_v47, 0.0 }
 0x182   :  { %v163_v49 = vrot.slane %v162_v48, 4 }
 0x184   :  { %v377_v50 = vpop.eup %376  ;;  %v164_v51 = vadd.f32 %v163_v49, %v162_v48 }
 0x185   :  { %v169_v52 = vsel %vm141_vm3, %v377_v50, 0.0 }
 0x186   :  { %v165_v53 = vrot.slane %v164_v51, 2  ;;  %v170_v54 = vrot.slane %v169_v52, 4 }
 0x188   :  { %v166_v55 = vadd.f32 %v165_v53, %v164_v51  ;;  %v171_v56 = vadd.f32 %v170_v54, %v169_v52 }
 0x18a   :  { %v167_v57 = vrot.slane %v166_v55, 1  ;;  %v172_v58 = vrot.slane %v171_v56, 2 }
 0x18c   :  { %v168_v59 = vadd.f32 %v167_v57, %v166_v55  ;;  %v173_v60 = vadd.f32 %v172_v58, %v171_v56 }
 0x18e   :  { %378 = vrcp.f32 %v168_v59  ;;  %v174_v61 = vrot.slane %v173_v60, 1 }
 0x190   :  { %v175_v62 = vadd.f32 %v174_v61, %v173_v60 }
 0x192   :  { %380 = vrcp.f32 %v175_v62 }
 0x19b   :  { %v379_v63 = vpop.eup %378 }
 0x19c   :  { %v178_v0 = vmul.f32 %v379_v63, %v375_v47 }
 0x19e   :  { %182 = vperm.xlu1 %366, %v178_v0  }
 0x19f   :  { %v381_v1 = vpop.eup %380 }
 0x1a0   :  { %v179_v3 = vmul.f32 %v381_v1, %v377_v50 }
 0x1a2   :  { %187 = vperm.xlu1 %366, %v179_v3  }
 0x219   :  { %v183_v8 = vpop.permute.xlu1 %182 }
 0x21a   :  { %v190_v9 = vmul.f32 %v183_v8, %v135_v7 }
 0x21c   :  { %v192_v11 = vsel %vm63_vm1, %v190_v9, 0.0 }
 0x21d   :  { %v193_v12 = vrot.slane %v192_v11, 4  ;;  %v188_v13 = vpop.permute.xlu1 %187 }
 0x21e   :  { %v191_v14 = vmul.f32 %v188_v13, %v136_v10 }
 0x21f   :  { %v194_v15 = vadd.f32 %v193_v12, %v192_v11 }
 0x220   :  { %v199_v16 = vsel %vm63_vm1, %v191_v14, 0.0 }
 0x221   :  { %v195_v2 = vrot.slane %v194_v15, 2  ;;  %v200_v17 = vrot.slane %v199_v16, 4 }
 0x223   :  { %v196_v18 = vadd.f32 %v195_v2, %v194_v15  ;;  %v201_v19 = vadd.f32 %v200_v17, %v199_v16 }
 0x225   :  { %v197_v20 = vrot.slane %v196_v18, 1  ;;  %v202_v21 = vrot.slane %v201_v19, 2 }
 0x227   :  { %v198_v22 = vadd.f32 %v197_v20, %v196_v18  ;;  %v203_v23 = vadd.f32 %v202_v21, %v201_v19 }
 0x229   :  { %v204_v24 = vrot.slane %v203_v23, 1  ;;  %v206_v25 = vpack.c.bf16 %v198_v22, %v198_v22 }
 0x22b   :  { %v205_v26 = vadd.f32 %v204_v24, %v203_v23  ;;  %v221_v27 = vunpack.c.l.b16 %v206_v25 }
 0x22d   :  { %v207_v4 = vpack.c.bf16 %v205_v26, %v205_v26 }
 0x22f   :  { %v222_v28 = vunpack.c.l.b16 %v207_v4 }
 0x231   :  { %v224_v29 = vsel %vm223_vm4, %v222_v28, %v221_v27 }
 0x232   :  { %v225_v30 = vpack.c.b16 %v224_v29, %v224_v29 }
 0x234   :  { %356 = vmatmul.mubr.msk.bf16.vlgmr.msra.gmra.mxu1 %vm63_vm1, %v225_v30 }
 0x2f4   :  { %v275_v38 = vpop.f32.mrf.mxu1 }
 0x2f5   :  { %v276_v39 = vadd.f32 %v331_v36, %v275_v38 }
 0x2f6   :  { %v357_v40 = vpop.f32.mrf.mxu1 }
 0x2f7   :  { %v288_v41 = vrot.slane %v276_v39, %v287_v37 }
 0x2f8   :  { %v278_v42 = vpop.f32.mrf.mxu1 }
 0x2f9   :  { %v289_v43 = vcombine.high %v288_v41, %v288_v41  ;;  %335 = vst.sshfl [vmem:[#allocation3] sm:$0x1 pattern:$0x73625140] %v288_v41 }
 0x2fa   :  { %v358_v44 = vpop.f32.mrf.mxu1 }
 0x2fb   :  { %336 = vst.sshfl [vmem:[#allocation3 + $0x1] sm:$0x1 pattern:$0x73625140] %v289_v43 }
 0x2fc   :  { %393 = shalt.err (!%p390_p4)
}
 0x2fd   :  { %s409_s7 = smov 16   ;;  %s410_s23 = smov 1  }
 0x2fe   :  { %319 = dma.vmem_to_hbm [thread:$0]  %s314_s21, 32, %s519_s8, [#allocation4], %s409_s7, %s409_s7, %s410_s23  }
 0x2ff   :  { %402 = dma.done.wait [#allocation4], 32  }
 0x300   :  { %403 = vsyncadd [#allocation4], 4294967264 }
 0x301   :  { %323 = vsyncpa [#allocation4], 1 }

</bundles_post_ra>
